<compile_context>
chip_gen: v7x
topology: tpu7x:2x2x1
jax: 0.10.0
libtpu: 0.0.40
codegen_flags: <defaults>
</compile_context>

<pallas_src>
import jax
import jax.numpy as jnp
from jax.experimental import pallas as pl
from jax.experimental.pallas import tpu as pltpu


def _cat_copy_kernel(in_ref, out_ref):
    # in_ref / out_ref: (1, 4) lane-dense slab. Single full-block store.
    out_ref[...] = in_ref[...]


def model_forward(x3, x4, x5, params=None):
    """Mirrors Model.forward(x3, x4, x5). x3 and the Linear params are dead code."""
    del x3, params
    dtype = jnp.result_type(x4.dtype, x5.dtype)

    # flatten(0,1) of x4:(2,1) and x5:(1,2,1) -> 2 elements each, presented lane-dense.
    a = x4.reshape(1, 2).astype(dtype)
    b = x5.reshape(1, 2).astype(dtype)
    # torch.cat((v2, v3), 0) in column-vector form == lane-dense (1, 4) row.
    packed = jnp.concatenate([a, b], axis=1)

    vmem_spec = pl.BlockSpec(memory_space=pltpu.MemorySpace.VMEM)
    nbytes = 4 * jnp.dtype(dtype).itemsize
    flat = pl.pallas_call(
        _cat_copy_kernel,
        out_shape=jax.ShapeDtypeStruct((1, 4), dtype),
        in_specs=[vmem_spec],
        out_specs=vmem_spec,
        cost_estimate=pl.CostEstimate(
            flops=0, transcendentals=0, bytes_accessed=2 * nbytes
        ),
    )(packed)

    # v4 / v5 / v6 are exact re-layouts of the same 4 elements -> free reshapes.
    v4 = flat.reshape(4, 1)      # torch.cat((v2, v3), 0)
    v5 = flat.reshape(2, 2, 1)   # torch.stack((v2, v3), 0)
    v6 = flat.reshape(1, 4)      # v4.transpose(0, 1)
    return v4, v5, v6


def init_params(key):
    # Linear(2, 1) x2 — defined in __init__ but never reached in forward (dead code).
    k1, k2, k3, k4 = jax.random.split(key, 4)
    bound = 1.0 / jnp.sqrt(2.0)
    return {
        "linear_1_w": jax.random.uniform(k1, (1, 2), jnp.float32, -bound, bound),
        "linear_1_b": jax.random.uniform(k2, (1,), jnp.float32, -bound, bound),
        "linear_2_w": jax.random.uniform(k3, (1, 2), jnp.float32, -bound, bound),
        "linear_2_b": jax.random.uniform(k4, (1,), jnp.float32, -bound, bound),
    }


if __name__ == "__main__":
    key = jax.random.PRNGKey(0)
    kx3, kx4, kx5, kp = jax.random.split(key, 4)

    x3 = jax.random.normal(kx3, (1, 2, 2), jnp.float32)
    x4 = jax.random.normal(kx4, (2, 1), jnp.float32)
    x5 = jax.random.normal(kx5, (1, 2, 1), jnp.float32)
    params = init_params(kp)

    v4, v5, v6 = model_forward(x3, x4, x5, params)
    jax.block_until_ready((v4, v5, v6))

    # Reference check in plain JAX (column-vector interpretation, see TODO above).
    ra = x4.reshape(2, 1)
    rb = x5.reshape(2, 1)
    ref_v4 = jnp.concatenate([ra, rb], axis=0)
    ref_v5 = jnp.stack([ra, rb], axis=0)
    ref_v6 = ref_v4.T
    assert v4.shape == (4, 1) and v5.shape == (2, 2, 1) and v6.shape == (1, 4)
    assert jnp.allclose(v4, ref_v4) and jnp.allclose(v5, ref_v5) and jnp.allclose(v6, ref_v6)

    print("KERNEL_OK")
</pallas_src>

<mosaic_0001>
module attributes {stable_mosaic.version = 11 : i64} {
  func.func @_cat_copy_kernel(%arg0: memref<1x4xf32, #tpu.memory_space<vmem>>, %arg1: memref<1x4xf32, #tpu.memory_space<vmem>>) attributes {dimension_semantics = [], scalar_prefetch = 0 : i64, scratch_operands = 0 : i64, tpu.core_type = #tpu.core_type<tc>} {
    %c0 = arith.constant 0 : index
    %c0_0 = arith.constant 0 : index
    %0 = vector.load %arg0[%c0, %c0_0] : memref<1x4xf32, #tpu.memory_space<vmem>>, vector<1x4xf32>
    %c0_1 = arith.constant 0 : index
    %c0_2 = arith.constant 0 : index
    %1 = vector.load %arg1[%c0_1, %c0_2] : memref<1x4xf32, #tpu.memory_space<vmem>>, vector<1x4xf32>
    tpu.vector_store %arg1[%c0_1, %c0_2], %0 {strides = array<i32>} : memref<1x4xf32, #tpu.memory_space<vmem>>, vector<1x4xf32>,
    return
  }
}

</mosaic_0001>

<bundles_post_ra>
// kernel: tpu_custom_call.1
= control target key start
LH: loop header
LB: loop body
LE: loop exit
PB: predicated region body
PF: predicated region fallthrough
CT: control target
= control target key end

     0   :  { %6 = vsyncpa [#allocation3], 0  ;;  %s125_s0 = inlined_call_operand.hbm [shape: f32[1,4], index: 0, kind: input, shape index: {}]   ;;  %s126_s1 = inlined_call_operand.hbm [shape: f32[1,4], index: 1, kind: output, shape index: {}]  }
   0x1   :  { %7 = vsyncpa [#allocation4], 0  ;;  %s89_s6 = smov [#allocation2]   ;;  %s41_s10 = scalar_lea.hbm %s125_s0, 16 }
   0x2   :  { %s14_s7 = sshll.u32 %s89_s6, 4  ;;  %p42_p0 = scmp.ne.s32.totalorder %s125_s0, %s41_s10  ;;  %s15_s7 = int_to_ptr.vmem [resolvable:$true] %s14_s7 }
   0x3   :  { %p45_p1 = scmp.lt.u32.totalorder %s41_s10, %s125_s0 }
   0x5   :  { %p47_p2 = pnand %p45_p1, %p42_p0 }
   0x7   :  { %50 = shalt.err (!%p47_p2)
}
   0x8   :  { %s51_s15 = scalar_lea.vmem %s15_s7, 16  ;;  %s55_s16 = scalar_lea.vmem %s15_s7, 32 }
   0x9   :  { %p52_p3 = scmp.ne.s32.totalorder %s15_s7, %s51_s15  ;;  %p56_p4 = scmp.lt.s32.totalorder %s15_s7, %s15_s7 }
   0xa   :  { %p57_p5 = scmp.lt.s32.totalorder %s55_s16, %s51_s15 }
   0xc   :  { %p58_p6 = por %p57_p5, %p56_p4 }
   0xe   :  { %p59_p7 = pnand %p58_p6, %p52_p3 }
  0x10   :  { %62 = shalt.err (!%p59_p7)
}
  0x11   :  { %17 = dma.hbm_to_vmem [thread:$0]  %s125_s0, 16, %s15_s7, [#allocation3]  }
  0x12   :  { %85 = dma.done.wait [#allocation3], 16  }
  0x13   :  { %86 = vsyncadd [#allocation3], 4294967280  ;;  %s90_s19 = smov [#allocation5]   ;;  %vm22_vm0 = vcmask 24576   ;;  %v21_v0 = vld [vmem:[#allocation2] sm:$0x1] }
  0x14   :  { %s30_s20 = sshll.u32 %s90_s19, 4  ;;  %23 = vst.msk [vmem:[#allocation5] sm:$0x1] %vm22_vm0, %v21_v0  ;;  %s31_s20 = int_to_ptr.vmem [resolvable:$true] %s30_s20 }
  0x15   :  { %s63_s21 = scalar_lea.vmem %s31_s20, 16  ;;  %s67_s22 = scalar_lea.vmem %s31_s20, 32 }
  0x16   :  { %p64_p8 = scmp.ne.s32.totalorder %s31_s20, %s63_s21  ;;  %p68_p9 = scmp.lt.s32.totalorder %s31_s20, %s31_s20 }
  0x17   :  { %p69_p10 = scmp.lt.s32.totalorder %s67_s22, %s63_s21 }
  0x19   :  { %p70_p11 = por %p69_p10, %p68_p9 }
  0x1b   :  { %p71_p12 = pnand %p70_p11, %p64_p8 }
  0x1d   :  { %74 = shalt.err (!%p71_p12)
}
  0x1e   :  { %s75_s0 = scalar_lea.hbm %s126_s1, 16 }
  0x1f   :  { %p76_p13 = scmp.ne.s32.totalorder %s126_s1, %s75_s0  ;;  %p79_p0 = scmp.lt.u32.totalorder %s75_s0, %s126_s1 }
  0x21   :  { %p81_p1 = pnand %p79_p0, %p76_p13 }
  0x23   :  { %84 = shalt.err (!%p81_p1)
}
  0x24   :  { %33 = dma.vmem_to_hbm [thread:$0]  %s31_s20, 16, %s126_s1, [#allocation4]  }
  0x25   :  { %87 = dma.done.wait [#allocation4], 16  }
  0x26   :  { %88 = vsyncadd [#allocation4], 4294967280 }
  0x27   :  { %37 = vsyncpa [#allocation3], 1 }
  0x28   :  { %38 = vsyncpa [#allocation4], 1 }

</bundles_post_ra>
